<compile_context>
chip_gen: v5e
topology: v5e:2x2
jax: 0.10.0
libtpu: 0.0.40
codegen_flags: <defaults>
</compile_context>

<pallas_src>
import numpy as np
import jax
import jax.numpy as jnp
from jax.experimental import pallas as pl
from jax.experimental.pallas import tpu as pltpu

BASE_DIM = 16
CH_STYLE = 1
# (Cin, Cout) of the four spectral-norm convs in the Sequential
STAGE_CHANNELS = [(CH_STYLE, BASE_DIM),
                  (BASE_DIM, 2 * BASE_DIM),
                  (2 * BASE_DIM, 4 * BASE_DIM),
                  (4 * BASE_DIM, 4 * BASE_DIM)]
BN_EPS = 1e-5
LEAKY_SLOPE = 0.2


# ----------------------------------------------------------------------------
# Pallas kernel: one encoder stage block = Conv3x3 (bf16 MXU matmul over
# im2col patches, f32 accumulate) -> BatchNorm2d (batch stats over lanes)
# -> LeakyReLU(0.2).  Outputs the raw conv activation (hook_c) and the
# normalized/activated slab, both channels-major (Cout_blk, M).
# ----------------------------------------------------------------------------
def _stage_kernel(patches_ref, wmat_ref, bias_ref, gamma_ref, beta_ref,
                  conv_ref, act_ref):
    # Conv2d(3x3, pad=1): (Cblk, 9*Cin) @ (9*Cin, M) on the MXU, bf16 in,
    # f32 accumulation, plus per-channel bias (broadcast over lanes).
    conv = jnp.dot(wmat_ref[...], patches_ref[...],
                   preferred_element_type=jnp.float32) + bias_ref[...]
    conv_ref[...] = conv  # hook_c output (pre-BN conv activation)

    # BatchNorm2d training-mode forward: per-channel stats over lanes, i.e.
    # over all (N, H, W) positions.  Biased variance, matching PyTorch.
    mean = jnp.mean(conv, axis=1, keepdims=True)
    var = jnp.mean((conv - mean) ** 2, axis=1, keepdims=True)
    xhat = (conv - mean) * jax.lax.rsqrt(var + BN_EPS)
    y = xhat * gamma_ref[...] + beta_ref[...]

    # LeakyReLU(0.2)
    act_ref[...] = jnp.where(y >= 0.0, y, LEAKY_SLOPE * y)


def _run_stage(patches_bf16, wmat_bf16, bias, gamma, beta):
    """patches: (9*Cin, M) bf16, wmat: (Cout, 9*Cin) bf16, params: (Cout, 1) f32."""
    k, m = patches_bf16.shape
    cout = wmat_bf16.shape[0]
    cblk = cout // 2                      # 2 parallel grid points (v7x megacore)

    grid_spec = pltpu.PrefetchScalarGridSpec(
        num_scalar_prefetch=0,
        grid=(2,),
        in_specs=[
            pl.BlockSpec((k, m), lambda i: (0, 0)),        # patches (shared)
            pl.BlockSpec((cblk, k), lambda i: (i, 0)),     # weight block
            pl.BlockSpec((cblk, 1), lambda i: (i, 0)),     # bias
            pl.BlockSpec((cblk, 1), lambda i: (i, 0)),     # gamma
            pl.BlockSpec((cblk, 1), lambda i: (i, 0)),     # beta
        ],
        out_specs=(pl.BlockSpec((cblk, m), lambda i: (i, 0)),   # conv (hook_c)
                   pl.BlockSpec((cblk, m), lambda i: (i, 0))),  # BN+LeakyReLU
    )
    return pl.pallas_call(
        _stage_kernel,
        out_shape=(jax.ShapeDtypeStruct((cout, m), jnp.float32),
                   jax.ShapeDtypeStruct((cout, m), jnp.float32)),
        grid_spec=grid_spec,
        compiler_params=pltpu.CompilerParams(
            dimension_semantics=("parallel",),
            vmem_limit_bytes=16 * 1024 * 1024),
    )(patches_bf16, wmat_bf16, bias, gamma, beta)


# ----------------------------------------------------------------------------
# Glue: channels-major im2col, reshape-average pooling, nearest interpolation,
# parameter setup.  All cheap, layout-only XLA work.
# ----------------------------------------------------------------------------
def _im2col_cm(x_nchw):
    """(N, Cin, H, W) -> (9*Cin, N*H*W) patches for 3x3, stride-1, pad-1 conv.

    K index ordering is (ci, dy, dx), matching w.reshape(Cout, Cin*9)."""
    n, c, h, w = x_nchw.shape
    xp = jnp.pad(x_nchw, ((0, 0), (0, 0), (1, 1), (1, 1)))
    taps = []
    for dy in range(3):
        for dx in range(3):
            taps.append(xp[:, :, dy:dy + h, dx:dx + w])    # (N, C, H, W)
    p = jnp.stack(taps, axis=2)                            # (N, C, 9, H, W)
    p = jnp.transpose(p, (1, 2, 0, 3, 4))                  # (C, 9, N, H, W)
    return p.reshape(c * 9, n * h * w)


def _avg_pool2_cm(act_cm, n, h, w):
    """AvgPool2d(2) on a channels-major (Cout, N*H*W) slab -> (Cout, N, H/2, W/2)."""
    cout = act_cm.shape[0]
    a = act_cm.reshape(cout, n, h // 2, 2, w // 2, 2)
    return jnp.mean(a, axis=(3, 5))


def _nearest_resize(f_nchw, out_h, out_w):
    """F.interpolate(..., size=(out_h, out_w)) with default mode='nearest'."""
    h_in, w_in = f_nchw.shape[2], f_nchw.shape[3]
    idx_h = (np.arange(out_h) * h_in) // out_h
    idx_w = (np.arange(out_w) * w_in) // out_w
    return f_nchw[:, :, idx_h, :][:, :, :, idx_w]


def _spectral_normalize(w, key, n_iters=30, eps=1e-12):
    """Spectral norm of a conv weight (Cout, Cin, 3, 3) via power iteration."""
    cout = w.shape[0]
    wm = w.reshape(cout, -1)
    u = jax.random.normal(key, (cout,), jnp.float32)
    u = u / (jnp.linalg.norm(u) + eps)
    v = wm.T @ u
    v = v / (jnp.linalg.norm(v) + eps)
    for _ in range(n_iters):
        v = wm.T @ u
        v = v / (jnp.linalg.norm(v) + eps)
        u = wm @ v
        u = u / (jnp.linalg.norm(u) + eps)
    sigma = u @ (wm @ v)
    return w / sigma


def init_params(key):
    """Deterministic synthetic parameters for the four conv + BN stages."""
    params = []
    for cin, cout in STAGE_CHANNELS:
        key, kw, kb, kg, kbe, ku = jax.random.split(key, 6)
        w = 0.2 * jax.random.normal(kw, (cout, cin, 3, 3), jnp.float32)
        w = _spectral_normalize(w, ku)                       # spectral_norm
        b = 0.1 * jax.random.normal(kb, (cout,), jnp.float32)
        gamma = 1.0 + 0.1 * jax.random.normal(kg, (cout,), jnp.float32)
        beta = 0.1 * jax.random.normal(kbe, (cout,), jnp.float32)
        params.append(dict(w=w, b=b, gamma=gamma, beta=beta))
    return params


def encoder_s_forward(image_nchw, params):
    """Matches EncoderS.forward: returns (output, hook_convs), both NCHW."""
    x = image_nchw.astype(jnp.float32)            # stays NCHW throughout
    hook_features = []   # AvgPool outputs (NCHW), as captured by hook_f
    hook_convs = []      # conv outputs (NCHW), as captured by hook_c

    for p in params:
        n, cin, h, w = x.shape
        cout = p['w'].shape[0]

        patches = _im2col_cm(x).astype(jnp.bfloat16)               # (9*Cin, M)
        wmat = p['w'].reshape(cout, cin * 9).astype(jnp.bfloat16)  # (Cout, 9*Cin)

        conv_cm, act_cm = _run_stage(
            patches, wmat,
            p['b'].reshape(cout, 1),
            p['gamma'].reshape(cout, 1),
            p['beta'].reshape(cout, 1))

        # hook_c: (Cout, M) -> (N, Cout, H, W)
        hook_convs.append(
            jnp.transpose(conv_cm.reshape(cout, n, h, w), (1, 0, 2, 3)))

        # AvgPool2d(2) as a reshape-average, then back to NCHW for next stage.
        pooled = _avg_pool2_cm(act_cm, n, h, w)                    # (Cout, N, H/2, W/2)
        x = jnp.transpose(pooled, (1, 0, 2, 3))                    # (N, Cout, H/2, W/2)
        hook_features.append(x)

    last_feature = hook_features[-1]                    # model(image), NCHW
    out_h, out_w = last_feature.shape[2], last_feature.shape[3]
    previous = [_nearest_resize(f, out_h, out_w) for f in hook_features[:3]]
    output = jnp.concatenate(previous + [last_feature], axis=1)
    return output, hook_convs


if __name__ == "__main__":
    key = jax.random.PRNGKey(0)
    k_img, k_par = jax.random.split(key)

    # Small deterministic input: batch=2, 1 "style" channel, 32x32 spatial.
    image = jax.random.normal(k_img, (2, CH_STYLE, 32, 32), jnp.float32)
    params = init_params(k_par)

    output, hook_convs = encoder_s_forward(image, params)
    output = jax.block_until_ready(output)
    hook_convs = [jax.block_until_ready(h) for h in hook_convs]

    # Shape checks mirroring the PyTorch module.
    assert output.shape == (2, 16 + 32 + 64 + 64, 2, 2), output.shape
    expected_conv_shapes = [(2, 16, 32, 32), (2, 32, 16, 16),
                            (2, 64, 8, 8), (2, 64, 4, 4)]
    for hc, s in zip(hook_convs, expected_conv_shapes):
        assert hc.shape == s, (hc.shape, s)
    assert bool(jnp.all(jnp.isfinite(output)))

    print("KERNEL_OK")
</pallas_src>

<mosaic_0001>
module attributes {stable_mosaic.version = 11 : i64} {
  func.func @_stage_kernel(%arg0: i32, %arg1: memref<9x2048xbf16, #tpu.memory_space<vmem>>, %arg2: memref<8x9xbf16, #tpu.memory_space<vmem>>, %arg3: memref<8x1xf32, #tpu.memory_space<vmem>>, %arg4: memref<8x1xf32, #tpu.memory_space<vmem>>, %arg5: memref<8x1xf32, #tpu.memory_space<vmem>>, %arg6: memref<8x2048xf32, #tpu.memory_space<vmem>>, %arg7: memref<8x2048xf32, #tpu.memory_space<vmem>>) attributes {dimension_semantics = [#tpu.dimension_semantics<parallel>], iteration_bounds = array<i64: 2>, scalar_prefetch = 0 : i64, scratch_operands = 0 : i64, tpu.core_type = #tpu.core_type<tc>, window_params = [{pipeline_mode = #tpu.pipeline_mode<synchronous>, transform_indices = @transform_0, window_bounds = array<i64: 9, 2048>}, {transform_indices = @transform_1, window_bounds = array<i64: 8, 9>}, {transform_indices = @transform_2, window_bounds = array<i64: 8, 1>}, {transform_indices = @transform_3, window_bounds = array<i64: 8, 1>}, {transform_indices = @transform_4, window_bounds = array<i64: 8, 1>}, {transform_indices = @transform_5, window_bounds = array<i64: 8, 2048>}, {transform_indices = @transform_6, window_bounds = array<i64: 8, 2048>}]} {
    %c0 = arith.constant 0 : index
    %c0_0 = arith.constant 0 : index
    %0 = vector.load %arg2[%c0, %c0_0] : memref<8x9xbf16, #tpu.memory_space<vmem>>, vector<8x9xbf16>
    %c0_1 = arith.constant 0 : index
    %c0_2 = arith.constant 0 : index
    %1 = vector.load %arg1[%c0_1, %c0_2] : memref<9x2048xbf16, #tpu.memory_space<vmem>>, vector<9x2048xbf16>
    %cst = arith.constant dense<0.000000e+00> : vector<8x2048xf32>
    %2 = tpu.matmul %0, %1, %cst {dimension_numbers = #tpu.dot_dimension_numbers<[1], [0], [0], [1], [0, 0, 1, 1], [], []>} : vector<8x9xbf16>, vector<9x2048xbf16>, vector<8x2048xf32> -> vector<8x2048xf32>
    %c0_3 = arith.constant 0 : index
    %c0_4 = arith.constant 0 : index
    %3 = vector.load %arg3[%c0_3, %c0_4] : memref<8x1xf32, #tpu.memory_space<vmem>>, vector<8x1xf32>
    %4 = vector.broadcast %3 : vector<8x1xf32> to vector<8x2048xf32>
    %5 = arith.addf %2, %4 : vector<8x2048xf32>
    %c0_5 = arith.constant 0 : index
    %c0_6 = arith.constant 0 : index
    %6 = vector.load %arg6[%c0_5, %c0_6] : memref<8x2048xf32, #tpu.memory_space<vmem>>, vector<8x2048xf32>
    tpu.vector_store %arg6[%c0_5, %c0_6], %5 {strides = array<i32>} : memref<8x2048xf32, #tpu.memory_space<vmem>>, vector<8x2048xf32>,
    %cst_7 = arith.constant dense<0.000000e+00> : vector<8xf32>
    %7 = vector.multi_reduction <add>, %5, %cst_7 [1] : vector<8x2048xf32> to vector<8xf32>
    %8 = vector.shape_cast %7 : vector<8xf32> to vector<8x1xf32>
    %cst_8 = arith.constant 2.048000e+03 : f32
    %9 = vector.broadcast %cst_8 : f32 to vector<8x1xf32>
    %10 = arith.divf %8, %9 : vector<8x1xf32>
    %11 = vector.broadcast %10 : vector<8x1xf32> to vector<8x2048xf32>
    %12 = arith.subf %5, %11 : vector<8x2048xf32>
    %13 = arith.mulf %12, %12 : vector<8x2048xf32>
    %cst_9 = arith.constant dense<0.000000e+00> : vector<8xf32>
    %14 = vector.multi_reduction <add>, %13, %cst_9 [1] : vector<8x2048xf32> to vector<8xf32>
    %15 = vector.shape_cast %14 : vector<8xf32> to vector<8x1xf32>
    %cst_10 = arith.constant 2.048000e+03 : f32
    %16 = vector.broadcast %cst_10 : f32 to vector<8x1xf32>
    %17 = arith.divf %15, %16 : vector<8x1xf32>
    %18 = vector.broadcast %10 : vector<8x1xf32> to vector<8x2048xf32>
    %19 = arith.subf %5, %18 : vector<8x2048xf32>
    %cst_11 = arith.constant 9.99999974E-6 : f32
    %20 = vector.broadcast %cst_11 : f32 to vector<8x1xf32>
    %21 = arith.addf %17, %20 : vector<8x1xf32>
    %22 = math.rsqrt %21 : vector<8x1xf32>
    %23 = vector.broadcast %22 : vector<8x1xf32> to vector<8x2048xf32>
    %24 = arith.mulf %19, %23 : vector<8x2048xf32>
    %c0_12 = arith.constant 0 : index
    %c0_13 = arith.constant 0 : index
    %25 = vector.load %arg4[%c0_12, %c0_13] : memref<8x1xf32, #tpu.memory_space<vmem>>, vector<8x1xf32>
    %26 = vector.broadcast %25 : vector<8x1xf32> to vector<8x2048xf32>
    %27 = arith.mulf %24, %26 : vector<8x2048xf32>
    %c0_14 = arith.constant 0 : index
    %c0_15 = arith.constant 0 : index
    %28 = vector.load %arg5[%c0_14, %c0_15] : memref<8x1xf32, #tpu.memory_space<vmem>>, vector<8x1xf32>
    %29 = vector.broadcast %28 : vector<8x1xf32> to vector<8x2048xf32>
    %30 = arith.addf %27, %29 : vector<8x2048xf32>
    %cst_16 = arith.constant 0.000000e+00 : f32
    %31 = vector.broadcast %cst_16 : f32 to vector<8x2048xf32>
    %32 = arith.cmpf oge, %30, %31 : vector<8x2048xf32>
    %cst_17 = arith.constant 2.000000e-01 : f32
    %33 = vector.broadcast %cst_17 : f32 to vector<8x2048xf32>
    %34 = arith.mulf %33, %30 : vector<8x2048xf32>
    %35 = arith.select %32, %30, %34 : vector<8x2048xi1>, vector<8x2048xf32>
    %c0_18 = arith.constant 0 : index
    %c0_19 = arith.constant 0 : index
    %36 = vector.load %arg7[%c0_18, %c0_19] : memref<8x2048xf32, #tpu.memory_space<vmem>>, vector<8x2048xf32>
    tpu.vector_store %arg7[%c0_18, %c0_19], %35 {strides = array<i32>} : memref<8x2048xf32, #tpu.memory_space<vmem>>, vector<8x2048xf32>,
    return
  }
  func.func @transform_0(%arg0: i32) -> (i32, i32) {
    %c0_i32 = arith.constant 0 : i32
    %c0_i32_0 = arith.constant 0 : i32
    %c0_i32_1 = arith.constant 0 : i32
    return %c0_i32, %c0_i32_0 : i32, i32
  }
  func.func @transform_1(%arg0: i32) -> (i32, i32) {
    %c0_i32 = arith.constant 0 : i32
    %c0_i32_0 = arith.constant 0 : i32
    return %arg0, %c0_i32 : i32, i32
  }
  func.func @transform_2(%arg0: i32) -> (i32, i32) {
    %c0_i32 = arith.constant 0 : i32
    %c0_i32_0 = arith.constant 0 : i32
    return %arg0, %c0_i32 : i32, i32
  }
  func.func @transform_3(%arg0: i32) -> (i32, i32) {
    %c0_i32 = arith.constant 0 : i32
    %c0_i32_0 = arith.constant 0 : i32
    return %arg0, %c0_i32 : i32, i32
  }
  func.func @transform_4(%arg0: i32) -> (i32, i32) {
    %c0_i32 = arith.constant 0 : i32
    %c0_i32_0 = arith.constant 0 : i32
    return %arg0, %c0_i32 : i32, i32
  }
  func.func @transform_5(%arg0: i32) -> (i32, i32) {
    %c0_i32 = arith.constant 0 : i32
    %c0_i32_0 = arith.constant 0 : i32
    return %arg0, %c0_i32 : i32, i32
  }
  func.func @transform_6(%arg0: i32) -> (i32, i32) {
    %c0_i32 = arith.constant 0 : i32
    %c0_i32_0 = arith.constant 0 : i32
    return %arg0, %c0_i32 : i32, i32
  }
}

</mosaic_0001>

<bundles_post_ra>
// kernel: tpu_custom_call.1
= control target key start
LH: loop header
LB: loop body
LE: loop exit
PB: predicated region body
PF: predicated region fallthrough
CT: control target
= control target key end

     0   :  { %s1850_s0 = inlined_call_operand.hbm [shape: bf16[9,2048], index: 0, kind: input, shape index: {}]   ;;  %s1851_s1 = inlined_call_operand.vmem [shape: bf16[16,9], index: 1, kind: input, shape index: {}]   ;;  %s1852_s2 = inlined_call_operand.vmem [shape: f32[16,1], index: 2, kind: input, shape index: {}]   ;;  %s1853_s3 = inlined_call_operand.vmem [shape: f32[16,1], index: 3, kind: input, shape index: {}]   ;;  %s1854_s4 = inlined_call_operand.vmem [shape: f32[16,1], index: 4, kind: input, shape index: {}]   ;;  %s1855_s5 = inlined_call_operand.hbm [shape: f32[16,2048], index: 5, kind: output, shape index: {0}]   ;;  %s1856_s6 = inlined_call_operand.hbm [shape: f32[16,2048], index: 6, kind: output, shape index: {1}]  }
   0x1   :  { %1858 = sst [smem:[#allocation11_spill]] %s1850_s0 }
   0x2   :  { %12 = vsyncpa [#allocation3], 0 }
   0x3   :  { %13 = vsyncpa [#allocation4], 0 }
   0x4   :  { %15 = vsyncpa [#allocation4 + $0x1], 0 }
   0x5   :  { %16 = vsyncpa [#allocation7], 0 }
   0x6   :  { %18 = vsyncpa [#allocation7 + $0x1], 0  ;;  %s1437_s21 = smov 0   ;;  %s1439_s22 = smov 0  }
   0x7   :  { %s1441_s23 = smov 0   ;;  %s1443_s24 = smov 0  }
   0x8 LB: > { %s1458_s25 = sadd.s32 4294967295, %s1394_s24   ;;  %s1081_s26 = sadd.s32 4294967294, %s1394_s24   ;;  %s1394_s24 = sphi %s1443_s24, %s1866_s24   ;;  %s1390_s23 = sphi %s1441_s23, %s1865_s23   ;;  %s1386_s22 = sphi %s1439_s22, %s1864_s22   ;;  %s1382_s21 = sphi %s1437_s21, %s1863_s21  }
   0x9   : > { %s1462_s27 = sadd.s32 1, %s1394_s24   ;;  %s156_s28 = sadd.s32 1, %s1390_s23 }
   0xa   : > { %s153_s29 = ssub.s32 %s1394_s24, %s1462_s27  ;;  %p166_p0 = scmp.ne.s32.totalorder %s1390_s23, %s1386_s22 }
   0xb   : > { %p154_p1 = scmp.eq.s32.totalorder %s153_s29, 0  ;;  %p167_p2 = scmp.eq.s32.totalorder %s1458_s25, 1 }
   0xc   : > { %p172_p3 = scmp.ne.s32.totalorder %s1386_s22, %s1382_s21  ;;  %p173_p4 = scmp.eq.s32.totalorder %s1081_s26, 1 }
   0xd   : > { %s1473_s30 = scalar_select %p154_p1, %s1390_s23, %s156_s28  }
   0xe   : > { %p1475_p5 = por %p167_p2, %p166_p0  ;;  %p1479_p6 = por %p173_p4, %p172_p3 }
   0xf   : > { %p1082_p7 = scmp.ge.s32.totalorder %s1394_s24, 1  ;;  %p206_p8 = scmp.lt.s32.totalorder %s1394_s24, 3 }
  0x10   : > { %p1218_p9 = scmp.eq.s32.totalorder %s1458_s25, 0  ;;  %s1861_s0 = sld [smem:[#allocation11_spill]] }
  0x11   : > { %p207_p10 = pnand %p1082_p7, %p206_p8  ;;  %s1396_s12 = smov [#allocation2]  }
  0x12   : > { %s219_s13 = sshll.u32 %s1396_s12, 4  ;;  %s1397_s14 = smov 1024   ;;  %s220_s13 = int_to_ptr.vmem [resolvable:$true] %s219_s13 }
  0x13   : > { %p1207_p11 = pneg %p207_p10  ;;  %s1398_s15 = smov 64  }
  0x14   : > { %263 = sbr.rel (%p207_p10) target bundleno = 546 (0x222), region = 40 }
  0x15   : > { %p1208_p12 = pnand %p1218_p9, %p1207_p11 }
  0x16   : > { %s217_s11 = sshll.u32 %s1861_s0, 4  ;;  %s218_s11 = int_to_ptr.hbm [resolvable:$true] %s217_s11 }
  0x17   : > { %1210 = dma.hbm_to_vmem [thread:$0]  (!%p1208_p12), %s218_s11, 2048, %s220_s13, [#allocation3], %s1397_s14, %s1397_s14, %s1398_s15  }
  0x19   : > { %1369 = dma.done.wait (%p1218_p9), [#allocation3], 2048  }
  0x1a   : > { %1371 = vsyncadd (%p1218_p9), [#allocation3], 4294965248  ;;  %vm418_vm0 = vcmask 1043456   ;;  %p310_p13 = scmp.lt.s32.totalorder %s1458_s25, 1  ;;  %v1399_v0 = vmov 0   ;;  %vm419_vm1 = vcmask 1044480  }
  0x1b   : > { %1259 = vset.pattern.permute.xlu0 %v1399_v0  ;;  %1260 = vset.pattern.permute.xlu1 %v1399_v0  ;;  %v1400_v1 = vmov 65535   ;;  %v1095_v4 = vld [vmem:[#allocation2] sm:$0xf]  ;;  %v1181_v6 = vld [vmem:[#allocation2 + $0x4] sm:$0xf]  ;;  %vm414_vm2 = vcmask 72704  }
  0x1c   : > { %s311_s16 = scalar_select %p310_p13, %s1458_s25, 1  ;;  %v420_v2 = vsel %vm418_vm0, 4294967295, %v1400_v1  ;;  %1261 = vset.pattern.permute.xlu2 %v1399_v0  ;;  %v1189_v5 = vld [vmem:[#allocation2 + $0x3c] sm:$0x10]  ;;  %v1097_v8 = vld [vmem:[#allocation2 + $0x40] sm:$0x10] }
  0x1d   : > { %v1497_v3 = vsel %vm419_vm1, %v420_v2, 0  ;;  %v1096_v7 = vor.u32 %v1189_v5, %v1095_v4  ;;  %v1103_v9 = vld [vmem:[#allocation2 + $0x8] sm:$0xf]  ;;  %v1100_v11 = vor.u32 %v1181_v6, %v1097_v8  ;;  %v1182_v13 = vld [vmem:[#allocation2 + $0xc] sm:$0xf]  ;;  %s1559_s10 = sand.u32 1, %s1386_s22  }
  0x1e   : > { %s1089_s17 = sshll.u32 %s311_s16, 2  ;;  %s1499_s18 = sshll.u32 %s311_s16, 3  ;;  %v1190_v10 = vld [vmem:[#allocation2 + $0x44] sm:$0x10]  ;;  %v1105_v14 = vld [vmem:[#allocation2 + $0x48] sm:$0x10] }
  0x1f   : > { %s313_s26 = scalar_lea.vmem %s1851_s1, %s1089_s17  ;;  %v1104_v12 = vor.u32 %v1190_v10, %v1103_v9  ;;  %s317_s9 = scalar_lea.vmem %s1852_s2, %s1499_s18  ;;  %v423_v15 = vand.u32 %v1096_v7, %v1497_v3  ;;  %v1108_v16 = vor.u32 %v1182_v13, %v1105_v14  ;;  %v1119_v18 = vld [vmem:[#allocation2 + $0x18] sm:$0xf]  ;;  %v1111_v20 = vld [vmem:[#allocation2 + $0x10] sm:$0xf]  ;;  %v426_v21 = vand.u32 %v1100_v11, %v1497_v3  ;;  %v1184_v25 = vld [vmem:[#allocation2 + $0x1c] sm:$0xf] }
  0x20   : > { %v1509_v17 = vld [vmem:[%s313_s26] sm:$0xf]  ;;  %v1192_v19 = vld [vmem:[#allocation2 + $0x54] sm:$0x10]  ;;  %v1191_v24 = vld [vmem:[#allocation2 + $0x4c] sm:$0x10]  ;;  %s325_s15 = scalar_lea.vmem %s1854_s4, %s1499_s18  ;;  %s321_s19 = scalar_lea.vmem %s1853_s3, %s1499_s18 }
  0x21   : > { %v429_v22 = vand.u32 %v1104_v12, %v1497_v3  ;;  %v1120_v23 = vor.u32 %v1192_v19, %v1119_v18  ;;  %v1121_v26 = vld [vmem:[#allocation2 + $0x58] sm:$0x10]  ;;  %477 = vmatpush.bf16.msra.mxu0 %v423_v15  ;;  %v432_v27 = vand.u32 %v1108_v16, %v1497_v3  ;;  %v1112_v28 = vor.u32 %v1191_v24, %v1111_v20  ;;  %v1183_v30 = vld [vmem:[#allocation2 + $0x14] sm:$0xf]  ;;  %v344_v32 = vld [vmem:[%s317_s9] sm:$0xff]  ;;  %s1857_s11 = sshll.u32 %s1559_s10, 7 }
  0x22   : > { %v1124_v29 = vor.u32 %v1184_v25, %v1121_v26  ;;  %v1113_v31 = vld [vmem:[#allocation2 + $0x50] sm:$0x10]  ;;  %490 = vmatpush.bf16.msra.mxu1 %v426_v21  ;;  %v1135_v35 = vld [vmem:[#allocation2 + $0x28] sm:$0xf]  ;;  %v1127_v37 = vld [vmem:[#allocation2 + $0x20] sm:$0xf]  ;;  %347 = vperm.xlu0 %1259, %v344_v32  }
  0x23   : > { %503 = vmatpush.bf16.msra.mxu2 %v429_v22  ;;  %v441_v33 = vand.u32 %v1120_v23, %v1497_v3  ;;  %v1116_v34 = vor.u32 %v1183_v30, %v1113_v31  ;;  %v1194_v36 = vld [vmem:[#allocation2 + $0x64] sm:$0x10]  ;;  %516 = vmatpush.bf16.msra.mxu3 %v432_v27  ;;  %v435_v38 = vand.u32 %v1112_v28, %v1497_v3  ;;  %v1193_v41 = vld [vmem:[#allocation2 + $0x5c] sm:$0x10]  ;;  %v1186_v42 = vld [vmem:[#allocation2 + $0x2c] sm:$0xf] }
  0x24   : > { %v444_v39 = vand.u32 %v1124_v29, %v1497_v3  ;;  %v1136_v40 = vor.u32 %v1194_v36, %v1135_v35  ;;  %v1137_v43 = vld [vmem:[#allocation2 + $0x68] sm:$0x10]  ;;  %1157 = vmatmul.msk.bf16.vlgmr.msra.gmra.mxu0 %vm414_vm2, %v1509_v17  ;;  %v1128_v45 = vor.u32 %v1193_v41, %v1127_v37  ;;  %v1185_v47 = vld [vmem:[#allocation2 + $0x24] sm:$0xf]  ;;  %v1151_v54 = vld [vmem:[#allocation2 + $0x38] sm:$0xf] }
  0x25   : > { %v438_v44 = vand.u32 %v1116_v34, %v1497_v3  ;;  %v1140_v46 = vor.u32 %v1186_v42, %v1137_v43  ;;  %v1129_v48 = vld [vmem:[#allocation2 + $0x60] sm:$0x10]  ;;  %1158 = vmatmul.msk.bf16.vlgmr.msra.gmra.mxu1 %vm414_vm2, %v1509_v17  ;;  %529 = vmatpush.bf16.msrb.mxu0 %v435_v38  ;;  %v1196_v55 = vld [vmem:[#allocation2 + $0x74] sm:$0x10]  ;;  %v1143_v56 = vld [vmem:[#allocation2 + $0x30] sm:$0xf] }
  0x26   : > { %1159 = vmatmul.msk.bf16.vlgmr.msra.gmra.mxu2 %vm414_vm2, %v1509_v17  ;;  %v453_v49 = vand.u32 %v1136_v40, %v1497_v3  ;;  %v1132_v50 = vor.u32 %v1185_v47, %v1129_v48  ;;  %1160 = vmatmul.msk.bf16.vlgmr.msra.gmra.mxu3 %vm414_vm2, %v1509_v17  ;;  %v447_v51 = vand.u32 %v1128_v45, %v1497_v3  ;;  %v1195_v57 = vld [vmem:[#allocation2 + $0x6c] sm:$0x10]  ;;  %v1188_v58 = vld [vmem:[#allocation2 + $0x3c] sm:$0xf]  ;;  %v1187_v60 = vld [vmem:[#allocation2 + $0x34] sm:$0xf] }
  0x27   : > { %555 = vmatpush.bf16.msrb.mxu2 %v441_v33  ;;  %v456_v52 = vand.u32 %v1140_v46, %v1497_v3  ;;  %568 = vmatpush.bf16.msrb.mxu3 %v444_v39  ;;  %v1153_v59 = vld [vmem:[#allocation2 + $0x78] sm:$0x10]  ;;  %v1145_v61 = vld [vmem:[#allocation2 + $0x70] sm:$0x10]  ;;  %v1152_v62 = vor.u32 %v1196_v55, %v1151_v54  ;;  %v1144_v63 = vor.u32 %v1195_v57, %v1143_v56  ;;  %s1572_s12 = scalar_lea.vmem [#allocation5], %s1857_s11  ;;  %s1197_s20 = sshll.u32 %s1458_s25, 7 }
  0x28   : > { %542 = vmatpush.bf16.msrb.mxu1 %v438_v44  ;;  %v450_v53 = vand.u32 %v1132_v50, %v1497_v3  ;;  %v1156_v0 = vor.u32 %v1188_v58, %v1153_v59  ;;  %v1148_v1 = vor.u32 %v1187_v60, %v1145_v61  ;;  %s921_s29 = scalar_lea.hbm %s1855_s5, %s1197_s20  ;;  %s923_s9 = sshll.u32 %s1572_s12, 4  ;;  %s924_s9 = int_to_ptr.vmem [resolvable:$true] %s923_s9 }
  0x29   : > { %581 = vmatpush.bf16.msra.mxu0 %v447_v51  ;;  %v465_v2 = vand.u32 %v1152_v62, %v1497_v3  ;;  %v459_v4 = vand.u32 %v1144_v63, %v1497_v3  ;;  %s925_s13 = sshll.u32 %s921_s29, 4  ;;  %s905_s14 = scalar_lea.sflag [#allocation4], %s1559_s10  ;;  %s926_s13 = int_to_ptr.hbm [resolvable:$true] %s925_s13 }
  0x2a   : > { %v468_v5 = vand.u32 %v1156_v0, %v1497_v3  ;;  %v462_v6 = vand.u32 %v1148_v1, %v1497_v3  ;;  %s1316_s17 = scalar_lea.hbm %s1855_s5, 256 }
  0x2b   : > { %607 = vmatpush.bf16.msra.mxu2 %v453_v49  ;;  %620 = vmatpush.bf16.msra.mxu3 %v456_v52 }
  0x2c   : > { %594 = vmatpush.bf16.msra.mxu1 %v450_v53 }
  0x34   : > { %1161 = vmatmul.msk.bf16.vlgmr.msrb.gmra.mxu0 %vm414_vm2, %v1509_v17 }
  0x35   : > { %1162 = vmatmul.msk.bf16.vlgmr.msrb.gmra.mxu1 %vm414_vm2, %v1509_v17  ;;  %633 = vmatpush.bf16.msrb.mxu0 %v459_v4 }
  0x36   : > { %1163 = vmatmul.msk.bf16.vlgmr.msrb.gmra.mxu2 %vm414_vm2, %v1509_v17  ;;  %1164 = vmatmul.msk.bf16.vlgmr.msrb.gmra.mxu3 %vm414_vm2, %v1509_v17 }
  0x37   : > { %659 = vmatpush.bf16.msrb.mxu2 %v465_v2  ;;  %672 = vmatpush.bf16.msrb.mxu3 %v468_v5 }
  0x38   : > { %646 = vmatpush.bf16.msrb.mxu1 %v462_v6 }
  0x44   : > { %1165 = vmatmul.msk.bf16.vlgmr.msra.gmra.mxu0 %vm414_vm2, %v1509_v17 }
  0x45   : > { %1166 = vmatmul.msk.bf16.vlgmr.msra.gmra.mxu1 %vm414_vm2, %v1509_v17 }
  0x46   : > { %1167 = vmatmul.msk.bf16.vlgmr.msra.gmra.mxu2 %vm414_vm2, %v1509_v17  ;;  %1168 = vmatmul.msk.bf16.vlgmr.msra.gmra.mxu3 %vm414_vm2, %v1509_v17 }
  0x54   : > { %1169 = vmatmul.msk.bf16.vlgmr.msrb.gmra.mxu0 %vm414_vm2, %v1509_v17 }
  0x55   : > { %1170 = vmatmul.msk.bf16.vlgmr.msrb.gmra.mxu1 %vm414_vm2, %v1509_v17 }
  0x56   : > { %1171 = vmatmul.msk.bf16.vlgmr.msrb.gmra.mxu2 %vm414_vm2, %v1509_v17  ;;  %1172 = vmatmul.msk.bf16.vlgmr.msrb.gmra.mxu3 %vm414_vm2, %v1509_v17 }
  0x94   : > { %v1562_v3 = vpop.permute.xlu0 %347 }
  0xa1   : > { %v479_v7 = vpop.f32.mrf.mxu0 }
  0xa2   : > { %v492_v8 = vpop.f32.mrf.mxu1  ;;  %v1565_v9 = vadd.f32 %v479_v7, %v1562_v3  ;;  %v1401_v7 = vmov 2048.0  }
  0xa3   : > { %v1568_v10 = vadd.f32 %v492_v8, %v1562_v3  ;;  %1262 = vrcp.f32 %v1401_v7 }
  0xa4   : > { %678 = vst [vmem:[%s1572_s12] sm:$0xff] %v1565_v9 }
  0xa5   : > { %679 = vst [vmem:[%s1572_s12 + $0x8] sm:$0xff] %v1568_v10  ;;  %v694_v23 = vadd.f32 %v1568_v10, %v1565_v9 }
  0xa9   : > { %v505_v11 = vpop.f32.mrf.mxu2  ;;  %v518_v13 = vpop.f32.mrf.mxu3 }
  0xaa   : > { %v1579_v12 = vadd.f32 %v505_v11, %v1562_v3  ;;  %v481_v14 = vpop.f32.mrf.mxu0  ;;  %v1582_v15 = vadd.f32 %v518_v13, %v1562_v3  ;;  %v494_v16 = vpop.f32.mrf.mxu1 }
  0xab   : > { %v1263_v8 = vpop.eup %1262 }
  0xac   : > { %680 = vst [vmem:[%s1572_s12 + $0x10] sm:$0xff] %v1579_v12  ;;  %v695_v24 = vadd.f32 %v694_v23, %v1579_v12  ;;  %v712_v11 = vmul.f32 2048.0, %v1263_v8  ;;  %vm716_vm3 = vweird.f32 %v1263_v8 }
  0xad   : > { %681 = vst [vmem:[%s1572_s12 + $0x18] sm:$0xff] %v1582_v15 }
  0xae   : > { %v696_v31 = vadd.f32 %v695_v24, %v1582_v15  ;;  %v713_v13 = vsub.f32 1.0, %v712_v11 }
  0xb0   : > { %v714_v14 = vmul.f32 %v1263_v8, %v713_v13 }
  0xb1   : > { %v507_v17 = vpop.f32.mrf.mxu2  ;;  %v520_v18 = vpop.f32.mrf.mxu3 }
  0xb2   : > { %v531_v19 = vpop.f32.mrf.mxu0  ;;  %v544_v21 = vpop.f32.mrf.mxu1  ;;  %v715_v16 = vadd.f32 %v1263_v8, %v714_v14 }
  0xb3   : > { %v1589_v20 = vadd.f32 %v531_v19, %v1562_v3  ;;  %v1592_v22 = vadd.f32 %v544_v21, %v1562_v3 }
  0xb4   : > { %v1648_v17 = vsel %vm716_vm3, %v1263_v8, %v715_v16 }
  0xb5   : > { %682 = vst [vmem:[%s1572_s12 + $0x20] sm:$0xff] %v1589_v20  ;;  %v697_v32 = vadd.f32 %v696_v31, %v1589_v20 }
  0xb6   : > { %683 = vst [vmem:[%s1572_s12 + $0x28] sm:$0xff] %v1592_v22 }
  0xb7   : > { %v698_v34 = vadd.f32 %v697_v32, %v1592_v22 }
  0xb9   : > { %v557_v25 = vpop.f32.mrf.mxu2  ;;  %v570_v27 = vpop.f32.mrf.mxu3 }
  0xba   : > { %v1602_v26 = vadd.f32 %v557_v25, %v1562_v3  ;;  %v533_v28 = vpop.f32.mrf.mxu0  ;;  %v1605_v29 = vadd.f32 %v570_v27, %v1562_v3  ;;  %v546_v30 = vpop.f32.mrf.mxu1 }
  0xbc   : > { %684 = vst [vmem:[%s1572_s12 + $0x30] sm:$0xff] %v1602_v26  ;;  %v699_v39 = vadd.f32 %v698_v34, %v1602_v26 }
  0xbd   : > { %685 = vst [vmem:[%s1572_s12 + $0x38] sm:$0xff] %v1605_v29 }
  0xbe   : > { %v700_v41 = vadd.f32 %v699_v39, %v1605_v29 }
  0xc1   : > { %v559_v33 = vpop.f32.mrf.mxu2  ;;  %v572_v35 = vpop.f32.mrf.mxu3 }
  0xc2   : > { %v583_v36 = vpop.f32.mrf.mxu0  ;;  %v596_v38 = vpop.f32.mrf.mxu1 }
  0xc3   : > { %v1615_v37 = vadd.f32 %v583_v36, %v1562_v3  ;;  %v1619_v40 = vadd.f32 %v596_v38, %v1562_v3 }
  0xc5   : > { %686 = vst [vmem:[%s1572_s12 + $0x40] sm:$0xff] %v1615_v37  ;;  %v701_v43 = vadd.f32 %v700_v41, %v1615_v37 }
  0xc6   : > { %687 = vst [vmem:[%s1572_s12 + $0x48] sm:$0xff] %v1619_v40 }
  0xc7   : > { %v702_v49 = vadd.f32 %v701_v43, %v1619_v40 }
  0xc9   : > { %v609_v42 = vpop.f32.mrf.mxu2  ;;  %v622_v45 = vpop.f32.mrf.mxu3 }
  0xca   : > { %v1628_v44 = vadd.f32 %v609_v42, %v1562_v3  ;;  %v585_v46 = vpop.f32.mrf.mxu0  ;;  %v1631_v47 = vadd.f32 %v622_v45, %v1562_v3  ;;  %v598_v48 = vpop.f32.mrf.mxu1 }
  0xcc   : > { %688 = vst [vmem:[%s1572_s12 + $0x50] sm:$0xff] %v1628_v44  ;;  %v703_v50 = vadd.f32 %v702_v49, %v1628_v44 }
  0xcd   : > { %689 = vst [vmem:[%s1572_s12 + $0x58] sm:$0xff] %v1631_v47 }
  0xce   : > { %v704_v56 = vadd.f32 %v703_v50, %v1631_v47 }
  0xd1   : > { %v611_v51 = vpop.f32.mrf.mxu2  ;;  %v624_v52 = vpop.f32.mrf.mxu3 }
  0xd2   : > { %v635_v53 = vpop.f32.mrf.mxu0  ;;  %v648_v55 = vpop.f32.mrf.mxu1 }
  0xd3   : > { %v636_v54 = vadd.f32 %v635_v53, %v1562_v3  ;;  %v649_v57 = vadd.f32 %v648_v55, %v1562_v3 }
  0xd5   : > { %690 = vst [vmem:[%s1572_s12 + $0x60] sm:$0xff] %v636_v54  ;;  %v705_v58 = vadd.f32 %v704_v56, %v636_v54 }
  0xd6   : > { %691 = vst [vmem:[%s1572_s12 + $0x68] sm:$0xff] %v649_v57 }
  0xd7   : > { %v706_v60 = vadd.f32 %v705_v58, %v649_v57 }
  0xd9   : > { %v661_v59 = vpop.f32.mrf.mxu2  ;;  %v674_v62 = vpop.f32.mrf.mxu3 }
  0xda   : > { %v662_v61 = vadd.f32 %v661_v59, %v1562_v3  ;;  %v637_v63 = vpop.f32.mrf.mxu0  ;;  %v675_v0 = vadd.f32 %v674_v62, %v1562_v3  ;;  %v650_v1 = vpop.f32.mrf.mxu1 }
  0xdb   : > { %v796_v63 = vld [vmem:[%s321_s19] sm:$0xff] }
  0xdc   : > { %692 = vst [vmem:[%s1572_s12 + $0x70] sm:$0xff] %v662_v61  ;;  %v707_v2 = vadd.f32 %v706_v60, %v662_v61 }
  0xdd   : > { %693 = vst [vmem:[%s1572_s12 + $0x78] sm:$0xff] %v675_v0 }
  0xde   : > { %v708_v4 = vadd.f32 %v707_v2, %v675_v0 }
  0xe0   : > { %709 = vadd.xlane.f32.xlu0 %v708_v4 }
  0xe1   : > { %v663_v5 = vpop.f32.mrf.mxu2  ;;  %v676_v6 = vpop.f32.mrf.mxu3 }
 0x153   : > { %v710_v18 = vpop.xlane.xlu0 %709 }
 0x154   : > { %v718_v3 = vmul.f32 %v1648_v17, %v710_v18 }
 0x156   : > { %v1652_v19 = vsub.f32 %v1565_v9, %v718_v3  ;;  %v1655_v21 = vsub.f32 %v1568_v10, %v718_v3  ;;  %v1658_v23 = vsub.f32 %v1579_v12, %v718_v3  ;;  %v1665_v27 = vsub.f32 %v1582_v15, %v718_v3 }
 0x157   : > { %v1668_v28 = vsub.f32 %v1589_v20, %v718_v3  ;;  %v1673_v30 = vsub.f32 %v1592_v22, %v718_v3  ;;  %v1678_v32 = vsub.f32 %v1602_v26, %v718_v3  ;;  %v1683_v20 = vsub.f32 %v1605_v29, %v718_v3 }
 0x158   : > { %v735_v24 = vmul.f32 %v1652_v19, %v1652_v19  ;;  %v736_v25 = vmul.f32 %v1655_v21, %v1655_v21  ;;  %v737_v9 = vmul.f32 %v1658_v23, %v1658_v23  ;;  %v738_v12 = vmul.f32 %v1665_v27, %v1665_v27 }
 0x159   : > { %v739_v15 = vmul.f32 %v1668_v28, %v1668_v28  ;;  %v740_v34 = vmul.f32 %v1673_v30, %v1673_v30  ;;  %v1688_v22 = vsub.f32 %v1615_v37, %v718_v3  ;;  %v741_v36 = vmul.f32 %v1678_v32, %v1678_v32 }
 0x15a   : > { %v751_v10 = vadd.f32 %v736_v25, %v735_v24  ;;  %v1693_v26 = vsub.f32 %v1619_v40, %v718_v3  ;;  %v742_v39 = vmul.f32 %v1683_v20, %v1683_v20  ;;  %v1698_v29 = vsub.f32 %v1628_v44, %v718_v3 }
 0x15b   : > { %v743_v42 = vmul.f32 %v1688_v22, %v1688_v22  ;;  %v1703_v43 = vsub.f32 %v1631_v47, %v718_v3  ;;  %v1707_v46 = vsub.f32 %v636_v54, %v718_v3  ;;  %v1711_v50 = vsub.f32 %v649_v57, %v718_v3  ;;  %v818_v57 = vld [vmem:[%s325_s15] sm:$0xff]  ;;  %s1310_s15 = sshra.s32 %s926_s13, 4  ;;  %s1311_s15 = int_to_ptr.hbm [resolvable:$true] %s1310_s15 }
 0x15c   : > { %v752_v31 = vadd.f32 %v751_v10, %v737_v9  ;;  %v744_v45 = vmul.f32 %v1693_v26, %v1693_v26  ;;  %v745_v48 = vmul.f32 %v1698_v29, %v1698_v29  ;;  %v1715_v52 = vsub.f32 %v662_v61, %v718_v3  ;;  %821 = vperm.xlu2 %1261, %v818_v57   ;;  %s1312_s11 = scalar_lea.hbm %s1311_s15, 128  ;;  %p1317_p3 = scmp.lt.s32.totalorder %s1311_s15, %s1855_s5 }
 0x15d   : > { %v746_v44 = vmul.f32 %v1703_v43, %v1703_v43  ;;  %v747_v47 = vmul.f32 %v1707_v46, %v1707_v46  ;;  %v1723_v54 = vsub.f32 %v675_v0, %v718_v3  ;;  %v748_v55 = vmul.f32 %v1711_v50, %v1711_v50  ;;  %p1313_p0 = scmp.ne.s32.totalorder %s1311_s15, %s1312_s11  ;;  %p1318_p4 = scmp.lt.s32.totalorder %s1316_s17, %s1312_s11 }
 0x15e   : > { %v753_v33 = vadd.f32 %v752_v31, %v738_v12  ;;  %v749_v58 = vmul.f32 %v1715_v52, %v1715_v52 }
 0x15f   : > { %v750_v60 = vmul.f32 %v1723_v54, %v1723_v54  ;;  %p1314_p1 = pnand %p1313_p0, %p1475_p5  ;;  %p1319_p7 = por %p1318_p4, %p1317_p3 }
 0x160   : > { %v754_v35 = vadd.f32 %v753_v33, %v739_v15 }
 0x161   : > { %p1315_p2 = pneg %p1314_p1 }
 0x162   : > { %v755_v38 = vadd.f32 %v754_v35, %v740_v34 }
 0x163   : > { %p1320_p8 = pnand %p1319_p7, %p1315_p2 }
 0x164   : > { %v756_v41 = vadd.f32 %v755_v38, %v741_v36 }
 0x166   : > { %v757_v37 = vadd.f32 %v756_v41, %v742_v39 }
 0x168   : > { %v758_v40 = vadd.f32 %v757_v37, %v743_v42 }
 0x16a   : > { %v759_v49 = vadd.f32 %v758_v40, %v744_v45 }
 0x16c   : > { %v760_v51 = vadd.f32 %v759_v49, %v745_v48 }
 0x16e   : > { %v761_v53 = vadd.f32 %v760_v51, %v746_v44 }
 0x170   : > { %v762_v56 = vadd.f32 %v761_v53, %v747_v47 }
 0x172   : > { %v763_v59 = vadd.f32 %v762_v56, %v748_v55 }
 0x174   : > { %v764_v61 = vadd.f32 %v763_v59, %v749_v58 }
 0x176   : > { %v765_v62 = vadd.f32 %v764_v61, %v750_v60 }
 0x178   : > { %766 = vadd.xlane.f32.xlu1 %v765_v62 }
 0x191   : > { %799 = vperm.xlu1 %1260, %v796_v63  }
 0x192   : > { %1323 = shalt.err (!%p1320_p8)
}
 0x193   : > { %1203 = dma.vmem_to_hbm [thread:$0]  (%p1475_p5), %s924_s9, 2048, %s926_s13, %s905_s14  }
 0x194   : > { %s1862_s0 = sshll.u32 %s1559_s10, 7  ;;  %s936_s28 = scalar_lea.hbm %s1856_s6, %s1197_s20 }
 0x195   : > { %s1787_s11 = scalar_lea.vmem [#allocation6], %s1862_s0  ;;  %s940_s25 = sshll.u32 %s936_s28, 4  ;;  %s941_s25 = int_to_ptr.hbm [resolvable:$true] %s940_s25 }
 0x196   : > { %s938_s29 = sshll.u32 %s1787_s11, 4  ;;  %s910_s20 = scalar_lea.sflag [#allocation7], %s1559_s10  ;;  %s939_s29 = int_to_ptr.vmem [resolvable:$true] %s938_s29 }
 0x197   : > { %s1338_s9 = sshra.s32 %s941_s25, 4  ;;  %s1344_s18 = scalar_lea.hbm %s1856_s6, 256  ;;  %s1339_s9 = int_to_ptr.hbm [resolvable:$true] %s1338_s9 }
 0x198   : > { %s1340_s13 = scalar_lea.hbm %s1339_s9, 128  ;;  %p1345_p12 = scmp.lt.s32.totalorder %s1339_s9, %s1856_s6 }
 0x199   : > { %p1341_p9 = scmp.ne.s32.totalorder %s1339_s9, %s1340_s13  ;;  %p1346_p13 = scmp.lt.s32.totalorder %s1344_s18, %s1340_s13 }
 0x19b   : > { %p1342_p10 = pnand %p1341_p9, %p1475_p5  ;;  %p1347_p0 = por %p1346_p13, %p1345_p12 }
 0x19d   : > { %p1343_p11 = pneg %p1342_p10 }
 0x19f   : > { %p1348_p1 = pnand %p1347_p0, %p1343_p11 }
 0x1eb   : > { %v767_v0 = vpop.xlane.xlu1 %766 }
 0x1ec   : > { %v768_v1 = vmul.f32 %v767_v0, %v1648_v17 }
 0x1ee   : > { %v769_v2 = vadd.f32 1e-05, %v768_v1 }
 0x1f0   : > { %1264 = vrsqrt.f32 %v769_v2  ;;  %vm776_vm5 = vweird.f32 %v769_v2 }
 0x1f6   : > { %v1265_v4 = vpop.eup %1264 }
 0x1f7   : > { %v771_v5 = vmul.f32 %v1265_v4, %v769_v2  ;;  %vm777_vm4 = vweird.f32 %v1265_v4 }
 0x1f8   : > { %vm778_vm6 = vmor %vm776_vm5, %vm777_vm4 }
 0x1f9   : > { %v772_v6 = vmul.f32 %v1265_v4, %v771_v5 }
 0x1fb   : > { %v773_v7 = vmul.f32 0.5, %v772_v6 }
 0x1fd   : > { %v774_v8 = vsub.f32 1.5, %v773_v7 }
 0x1ff   : > { %v775_v11 = vmul.f32 %v1265_v4, %v774_v8 }
 0x201   : > { %v779_v13 = vsel %vm778_vm6, %v1265_v4, %v775_v11 }
 0x202   : > { %v780_v14 = vmul.f32 %v779_v13, %v1652_v19  ;;  %v781_v16 = vmul.f32 %v779_v13, %v1655_v21  ;;  %v782_v18 = vmul.f32 %v779_v13, %v1658_v23  ;;  %v783_v17 = vmul.f32 %v779_v13, %v1665_v27  ;;  %v1766_v27 = vpop.permute.xlu2 %821 }
 0x203   : > { %v800_v3 = vpop.permute.xlu1 %799  ;;  %v784_v24 = vmul.f32 %v779_v13, %v1668_v28  ;;  %v785_v25 = vmul.f32 %v779_v13, %v1673_v30  ;;  %v786_v9 = vmul.f32 %v779_v13, %v1678_v32  ;;  %v787_v10 = vmul.f32 %v779_v13, %v1683_v20 }
 0x204   : > { %v788_v12 = vmul.f32 %v779_v13, %v1688_v22  ;;  %v802_v31 = vmul.f32 %v800_v3, %v780_v14  ;;  %v803_v15 = vmul.f32 %v800_v3, %v781_v16  ;;  %v789_v19 = vmul.f32 %v779_v13, %v1693_v26 }
 0x205   : > { %v790_v21 = vmul.f32 %v779_v13, %v1698_v29  ;;  %v791_v23 = vmul.f32 %v779_v13, %v1703_v43  ;;  %v804_v33 = vmul.f32 %v800_v3, %v782_v18  ;;  %v792_v28 = vmul.f32 %v779_v13, %v1707_v46 }
 0x206   : > { %v793_v30 = vmul.f32 %v779_v13, %v1711_v50  ;;  %v805_v32 = vmul.f32 %v800_v3, %v783_v17  ;;  %v806_v34 = vmul.f32 %v800_v3, %v784_v24  ;;  %v794_v20 = vmul.f32 %v779_v13, %v1715_v52 }
 0x207   : > { %v795_v35 = vmul.f32 %v779_v13, %v1723_v54  ;;  %v807_v22 = vmul.f32 %v800_v3, %v785_v25  ;;  %v808_v36 = vmul.f32 %v800_v3, %v786_v9  ;;  %v809_v38 = vmul.f32 %v800_v3, %v787_v10 }
 0x208   : > { %v810_v26 = vmul.f32 %v800_v3, %v788_v12  ;;  %v824_v39 = vadd.f32 %v1766_v27, %v802_v31  ;;  %v825_v41 = vadd.f32 %v1766_v27, %v803_v15  ;;  %v811_v29 = vmul.f32 %v800_v3, %v789_v19 }
 0x209   : > { %v812_v42 = vmul.f32 %v800_v3, %v790_v21  ;;  %v813_v37 = vmul.f32 %v800_v3, %v791_v23  ;;  %v826_v43 = vadd.f32 %v1766_v27, %v804_v33  ;;  %v814_v45 = vmul.f32 %v800_v3, %v792_v28 }
 0x20a   : > { %v815_v40 = vmul.f32 %v800_v3, %v793_v30  ;;  %v827_v46 = vadd.f32 %v1766_v27, %v805_v32  ;;  %v828_v48 = vadd.f32 %v1766_v27, %v806_v34  ;;  %v816_v49 = vmul.f32 %v800_v3, %v794_v20 }
 0x20b   : > { %v817_v50 = vmul.f32 %v800_v3, %v795_v35  ;;  %v829_v44 = vadd.f32 %v1766_v27, %v807_v22  ;;  %v830_v51 = vadd.f32 %v1766_v27, %v808_v36  ;;  %v831_v52 = vadd.f32 %v1766_v27, %v809_v38 }
 0x20c   : > { %v832_v47 = vadd.f32 %v1766_v27, %v810_v26  ;;  %vm840_vm7 = vcmp.ge.f32.partialorder %v824_v39, 0.0  ;;  %vm841_vm8 = vcmp.ge.f32.partialorder %v825_v41, 0.0  ;;  %v833_v53 = vadd.f32 %v1766_v27, %v811_v29 }
 0x20d   : > { %v856_v54 = vmul.f32 0.2, %v824_v39  ;;  %v857_v55 = vmul.f32 0.2, %v825_v41  ;;  %v858_v56 = vmul.f32 0.2, %v826_v43  ;;  %v834_v57 = vadd.f32 %v1766_v27, %v812_v42 }
 0x20e   : > { %vm842_vm9 = vcmp.ge.f32.partialorder %v826_v43, 0.0  ;;  %v859_v58 = vmul.f32 0.2, %v827_v46  ;;  %v860_v59 = vmul.f32 0.2, %v828_v48  ;;  %vm843_vm10 = vcmp.ge.f32.partialorder %v827_v46, 0.0 }
 0x20f   : > { %vm844_vm11 = vcmp.ge.f32.partialorder %v828_v48, 0.0  ;;  %v861_v60 = vmul.f32 0.2, %v829_v44  ;;  %v872_v61 = vsel %vm840_vm7, %v824_v39, %v856_v54  ;;  %v835_v62 = vadd.f32 %v1766_v27, %v813_v37 }
 0x210   : > { %vm845_vm12 = vcmp.ge.f32.partialorder %v829_v44, 0.0  ;;  %v862_v63 = vmul.f32 0.2, %v830_v51  ;;  %v873_v0 = vsel %vm841_vm8, %v825_v41, %v857_v55  ;;  %888 = vst [vmem:[%s1787_s11] sm:$0xff] %v872_v61  ;;  %v836_v1 = vadd.f32 %v1766_v27, %v814_v45 }
 0x211   : > { %vm846_vm13 = vcmp.ge.f32.partialorder %v830_v51, 0.0  ;;  %v863_v2 = vmul.f32 0.2, %v831_v52  ;;  %v874_v4 = vsel %vm842_vm9, %v826_v43, %v858_v56  ;;  %vm847_vm14 = vcmp.ge.f32.partialorder %v831_v52, 0.0  ;;  %889 = vst [vmem:[%s1787_s11 + $0x8] sm:$0xff] %v873_v0 }
 0x212   : > { %v864_v5 = vmul.f32 0.2, %v832_v47  ;;  %v875_v6 = vsel %vm843_vm10, %v827_v46, %v859_v58  ;;  %v876_v7 = vsel %vm844_vm11, %v828_v48, %v860_v59  ;;  %v837_v8 = vadd.f32 %v1766_v27, %v815_v40  ;;  %890 = vst [vmem:[%s1787_s11 + $0x10] sm:$0xff] %v874_v4 }
 0x213   : > { %vm848_vm15 = vcmp.ge.f32.partialorder %v832_v47, 0.0  ;;  %v865_v11 = vmul.f32 0.2, %v833_v53  ;;  %v877_v13 = vsel %vm845_vm12, %v829_v44, %v861_v60  ;;  %v838_v14 = vadd.f32 %v1766_v27, %v816_v49  ;;  %891 = vst [vmem:[%s1787_s11 + $0x18] sm:$0xff] %v875_v6 }
 0x214   : > { %vm849_vm0 = vcmp.ge.f32.partialorder %v833_v53, 0.0  ;;  %v866_v16 = vmul.f32 0.2, %v834_v57  ;;  %v878_v18 = vsel %vm846_vm13, %v830_v51, %v862_v63  ;;  %v839_v3 = vadd.f32 %v1766_v27, %v817_v50  ;;  %892 = vst [vmem:[%s1787_s11 + $0x20] sm:$0xff] %v876_v7 }
 0x215   : > { %vm850_vm1 = vcmp.ge.f32.partialorder %v834_v57, 0.0  ;;  %v867_v17 = vmul.f32 0.2, %v835_v62  ;;  %v879_v24 = vsel %vm847_vm14, %v831_v52, %v863_v2  ;;  %vm851_vm2 = vcmp.ge.f32.partialorder %v835_v62, 0.0  ;;  %893 = vst [vmem:[%s1787_s11 + $0x28] sm:$0xff] %v877_v13 }
 0x216   : > { %v868_v25 = vmul.f32 0.2, %v836_v1  ;;  %v880_v9 = vsel %vm848_vm15, %v832_v47, %v864_v5  ;;  %vm852_vm3 = vcmp.ge.f32.partialorder %v836_v1, 0.0  ;;  %v869_v10 = vmul.f32 0.2, %v837_v8  ;;  %894 = vst [vmem:[%s1787_s11 + $0x30] sm:$0xff] %v878_v18 }
 0x217   : > { %v881_v12 = vsel %vm849_vm0, %v833_v53, %v865_v11  ;;  %vm853_vm4 = vcmp.ge.f32.partialorder %v837_v8, 0.0  ;;  %v870_v31 = vmul.f32 0.2, %v838_v14  ;;  %v882_v15 = vsel %vm850_vm1, %v834_v57, %v866_v16  ;;  %895 = vst [vmem:[%s1787_s11 + $0x38] sm:$0xff] %v879_v24 }
 0x218   : > { %vm854_vm5 = vcmp.ge.f32.partialorder %v838_v14, 0.0  ;;  %v871_v19 = vmul.f32 0.2, %v839_v3  ;;  %v883_v21 = vsel %vm851_vm2, %v835_v62, %v867_v17  ;;  %896 = vst [vmem:[%s1787_s11 + $0x40] sm:$0xff] %v880_v9  ;;  %vm855_vm6 = vcmp.ge.f32.partialorder %v839_v3, 0.0 }
 0x219   : > { %v884_v23 = vsel %vm852_vm3, %v836_v1, %v868_v25  ;;  %897 = vst [vmem:[%s1787_s11 + $0x48] sm:$0xff] %v881_v12  ;;  %v885_v33 = vsel %vm853_vm4, %v837_v8, %v869_v10  ;;  %v886_v27 = vsel %vm854_vm5, %v838_v14, %v870_v31 }
 0x21a   : > { %898 = vst [vmem:[%s1787_s11 + $0x50] sm:$0xff] %v882_v15  ;;  %v887_v28 = vsel %vm855_vm6, %v839_v3, %v871_v19 }
 0x21b   : > { %899 = vst [vmem:[%s1787_s11 + $0x58] sm:$0xff] %v883_v21 }
 0x21c   : > { %900 = vst [vmem:[%s1787_s11 + $0x60] sm:$0xff] %v884_v23 }
 0x21d   : > { %901 = vst [vmem:[%s1787_s11 + $0x68] sm:$0xff] %v885_v33 }
 0x21e   : > { %902 = vst [vmem:[%s1787_s11 + $0x70] sm:$0xff] %v886_v27 }
 0x21f   : > { %903 = vst [vmem:[%s1787_s11 + $0x78] sm:$0xff] %v887_v28 }
 0x220   : > { %1351 = shalt.err (!%p1348_p1)
}
 0x221   : > { %1204 = dma.vmem_to_hbm [thread:$0]  (%p1475_p5), %s939_s29, 2048, %s941_s25, %s910_s20  }
 0x222 PF: > { %p1220_p2 = scmp.ge.s32.totalorder %s1394_s24, 2  ;;  %s952_s10 = sand.u32 1, %s1382_s21  }
 0x223   : > { %s953_s19 = scalar_lea.sflag [#allocation4], %s952_s10 }
 0x224   : > { %p1212_p3 = pnand %p1220_p2, %p1479_p6 }
 0x226   : > { %p1213_p4 = pneg %p1212_p3 }
 0x228   : > { %1373 = dma.done.wait (%p1213_p4), %s953_s19, 2048  }
 0x229   : > { %1375 = vsyncadd (%p1213_p4), %s953_s19, 4294965248  ;;  %s963_s0 = scalar_lea.sflag [#allocation7], %s952_s10 }
 0x22a   : > { %1377 = dma.done.wait (%p1213_p4), %s963_s0, 2048  }
 0x22b   : > { %1379 = vsyncadd (%p1213_p4), %s963_s0, 4294965248  ;;  %p21_p5 = scmp.ge.s32.totalorder %s1462_s27, 4   ;;  %s1863_s21 = smov %s1386_s22 }
 0x22c   : > { %s1864_s22 = smov %s1390_s23  ;;  %s1865_s23 = smov %s1473_s30 }
 0x22d   : > { %s1866_s24 = smov %s1462_s27  ;;  %23 = sbr.rel (!%p21_p5) target bundleno = 8 (0x8), region = 106 }
 0x232   :  { %969 = vsyncpa [#allocation3], 1 }
 0x233   :  { %971 = vsyncpa [#allocation3 + $0x1], 1 }
 0x234   :  { %972 = vsyncpa [#allocation4], 1 }
 0x235   :  { %974 = vsyncpa [#allocation4 + $0x1], 1 }
 0x236   :  { %975 = vsyncpa [#allocation7], 1 }
 0x237   :  { %977 = vsyncpa [#allocation7 + $0x1], 1 }

</bundles_post_ra>
